<compile_context>
chip_gen: v5e
topology: v5e:2x2
jax: 0.10.0
libtpu: 0.0.40
codegen_flags: <defaults>
</compile_context>

<pallas_src>
import functools
import math

import jax
import jax.numpy as jnp
from jax.experimental import pallas as pl
from jax.experimental.pallas import tpu as pltpu

# Live tiles (double-buffered inputs + outputs + resident weights) must fit
# ~24 MiB so the kernels run on v7x (64 MiB physical / 32 MiB scoped default)
# as well as v5e/v6e. The explicit limit unlocks >16 MiB scoped VMEM on v5e.
_VMEM_TILE_BUDGET = 24 << 20
_VMEM_LIMIT_BYTES = 48 << 20

_COMPILER_PARAMS = pltpu.CompilerParams(
    dimension_semantics=("parallel",),
    vmem_limit_bytes=_VMEM_LIMIT_BYTES,
)


def _row_tile(rows, per_row_bytes, fixed_bytes=0):
    """Largest multiple-of-8 row tile whose live buffers fit the VMEM budget."""
    avail = max(_VMEM_TILE_BUDGET - fixed_bytes, 8 * max(per_row_bytes, 1))
    tm = avail // max(per_row_bytes, 1)
    tm = int(min(tm, 1024, max(rows, 8)))
    return max(8, (tm // 8) * 8)


def _pad_rows(x2d, tm):
    rows = x2d.shape[0]
    grid_n = pl.cdiv(rows, tm)
    rows_p = grid_n * tm
    if rows_p != rows:
        x2d = jnp.pad(x2d, ((0, rows_p - rows), (0, 0)))
    return x2d, grid_n, rows_p


def _const2(i):  # resident 2-D weight block
    return (0, 0)


# ---------------- Fused RMSNorm + Q/K/V projection ----------------------------
def _rmsnorm_qkv_kernel(x_ref, lnw_ref, wq_ref, wk_ref, wv_ref,
                        q_ref, k_ref, v_ref, *, eps, inv_d):
    x = x_ref[...].astype(jnp.float32)                    # (tm, C)
    w = lnw_ref[...].astype(jnp.float32)                  # (1, C)
    ms = jnp.sum(x * x, axis=-1, keepdims=True) * inv_d   # XLU cross-lane sum
    xn = (x * jax.lax.rsqrt(ms + eps)) * w                # EUP rsqrt
    q_ref[...] = jnp.dot(xn, wq_ref[...].astype(jnp.float32),
                         preferred_element_type=jnp.float32).astype(q_ref.dtype)
    k_ref[...] = jnp.dot(xn, wk_ref[...].astype(jnp.float32),
                         preferred_element_type=jnp.float32).astype(k_ref.dtype)
    v_ref[...] = jnp.dot(xn, wv_ref[...].astype(jnp.float32),
                         preferred_element_type=jnp.float32).astype(v_ref.dtype)


def rmsnorm_qkv(x2d, ln_w, wq, wk, wv, eps):
    rows, C = x2d.shape
    Nq = wq.shape[1]
    Nkv = wk.shape[1]
    xi = x2d.dtype.itemsize
    per_row = 2 * (C + Nq + 2 * Nkv) * xi + 4 * C          # tiles + f32 xn
    fixed = 2 * (C * Nq + 2 * C * Nkv + C) * wq.dtype.itemsize
    tm = _row_tile(rows, per_row, fixed)
    x2d_p, grid_n, rows_p = _pad_rows(x2d, tm)

    q, k, v = pl.pallas_call(
        functools.partial(_rmsnorm_qkv_kernel, eps=float(eps), inv_d=1.0 / C),
        out_shape=(
            jax.ShapeDtypeStruct((rows_p, Nq), x2d.dtype),
            jax.ShapeDtypeStruct((rows_p, Nkv), x2d.dtype),
            jax.ShapeDtypeStruct((rows_p, Nkv), x2d.dtype),
        ),
        grid_spec=pltpu.PrefetchScalarGridSpec(
            num_scalar_prefetch=0,
            grid=(grid_n,),
            in_specs=[
                pl.BlockSpec((tm, C), lambda i: (i, 0)),
                pl.BlockSpec((1, C), _const2),
                pl.BlockSpec((C, Nq), _const2),
                pl.BlockSpec((C, Nkv), _const2),
                pl.BlockSpec((C, Nkv), _const2),
            ],
            out_specs=(
                pl.BlockSpec((tm, Nq), lambda i: (i, 0)),
                pl.BlockSpec((tm, Nkv), lambda i: (i, 0)),
                pl.BlockSpec((tm, Nkv), lambda i: (i, 0)),
            ),
        ),
        compiler_params=_COMPILER_PARAMS,
    )(x2d_p, ln_w.reshape(1, C), wq, wk, wv)
    if rows_p != rows:
        q, k, v = q[:rows], k[:rows], v[:rows]
    return q, k, v


# ---------------- Causal GQA attention (all heads per batch step) -------------
def _gqa_attention_kernel(q_ref, k_ref, v_ref, o_ref, *, scale, rep):
    q = q_ref[0].astype(jnp.float32)          # (H, T, hd)
    k = k_ref[0].astype(jnp.float32)          # (Hkv, T, hd)
    v = v_ref[0].astype(jnp.float32)          # (Hkv, T, hd)
    hkv, t, hd = k.shape
    qg = q.reshape(hkv, rep, t, hd)           # GQA broadcast: split head axis

    s = jnp.einsum("grqd,gkd->grqk", qg, k,
                   preferred_element_type=jnp.float32) * scale
    row = jax.lax.broadcasted_iota(jnp.int32, (t, t), 0)
    col = jax.lax.broadcasted_iota(jnp.int32, (t, t), 1)
    s = jnp.where((col <= row)[None, None], s, -jnp.inf)

    m = jnp.max(s, axis=-1, keepdims=True)
    p = jnp.exp(s - m)
    denom = jnp.sum(p, axis=-1, keepdims=True)
    o = jnp.einsum("grqk,gkd->grqd", p, v, preferred_element_type=jnp.float32)
    o = o / denom
    o_ref[0] = o.reshape(hkv * rep, t, hd).astype(o_ref.dtype)


def causal_gqa_attention(q, k, v, *, scale):
    """q: (B, H, T, hd); k, v: (B, Hkv, T, hd). Returns (B, H, T, hd)."""
    B, H, T, hd = q.shape
    Hkv = k.shape[1]
    rep = H // Hkv
    # TODO(synk): for long sequences, tile the KV axis (flash-attention style)
    # instead of materializing the full (Hkv, rep, T, T) score tensor in VMEM.
    return pl.pallas_call(
        functools.partial(_gqa_attention_kernel, scale=float(scale), rep=rep),
        out_shape=jax.ShapeDtypeStruct((B, H, T, hd), q.dtype),
        grid_spec=pltpu.PrefetchScalarGridSpec(
            num_scalar_prefetch=0,
            grid=(B,),
            in_specs=[
                pl.BlockSpec((1, H, T, hd), lambda b: (b, 0, 0, 0)),
                pl.BlockSpec((1, Hkv, T, hd), lambda b: (b, 0, 0, 0)),
                pl.BlockSpec((1, Hkv, T, hd), lambda b: (b, 0, 0, 0)),
            ],
            out_specs=pl.BlockSpec((1, H, T, hd), lambda b: (b, 0, 0, 0)),
        ),
        compiler_params=_COMPILER_PARAMS,
    )(q, k, v)


# ---------------- Fused output projection + residual --------------------------
def _oproj_residual_kernel(a_ref, wo_ref, res_ref, o_ref):
    o = jnp.dot(a_ref[...].astype(jnp.float32), wo_ref[...].astype(jnp.float32),
                preferred_element_type=jnp.float32)
    o_ref[...] = (o + res_ref[...].astype(jnp.float32)).astype(o_ref.dtype)


def oproj_residual(attn2d, wo, res2d):
    rows, C = attn2d.shape
    N = wo.shape[1]
    xi = attn2d.dtype.itemsize
    per_row = 2 * (C + N + C) * xi
    fixed = 2 * C * N * wo.dtype.itemsize
    tm = _row_tile(rows, per_row, fixed)
    a_p, grid_n, rows_p = _pad_rows(attn2d, tm)
    r_p, _, _ = _pad_rows(res2d, tm)

    out = pl.pallas_call(
        _oproj_residual_kernel,
        out_shape=jax.ShapeDtypeStruct((rows_p, N), attn2d.dtype),
        grid_spec=pltpu.PrefetchScalarGridSpec(
            num_scalar_prefetch=0,
            grid=(grid_n,),
            in_specs=[
                pl.BlockSpec((tm, C), lambda i: (i, 0)),
                pl.BlockSpec((C, N), _const2),
                pl.BlockSpec((tm, N), lambda i: (i, 0)),
            ],
            out_specs=pl.BlockSpec((tm, N), lambda i: (i, 0)),
        ),
        compiler_params=_COMPILER_PARAMS,
    )(a_p, wo, r_p)
    return out[:rows] if rows_p != rows else out


# ---------------- Fused RMSNorm + SwiGLU MLP + residual ------------------------
def _rmsnorm_swiglu_residual_kernel(h_ref, lnw_ref, wg_ref, wu_ref, wd_ref,
                                    o_ref, *, eps, inv_d):
    h = h_ref[...].astype(jnp.float32)                    # (tm, C)
    w = lnw_ref[...].astype(jnp.float32)                  # (1, C)
    ms = jnp.sum(h * h, axis=-1, keepdims=True) * inv_d
    hn = (h * jax.lax.rsqrt(ms + eps)) * w
    g = jnp.dot(hn, wg_ref[...].astype(jnp.float32),
                preferred_element_type=jnp.float32)
    u = jnp.dot(hn, wu_ref[...].astype(jnp.float32),
                preferred_element_type=jnp.float32)
    act = (g * (1.0 / (1.0 + jnp.exp(-g)))) * u           # SiLU(gate) * up
    mlp = jnp.dot(act, wd_ref[...].astype(jnp.float32),
                  preferred_element_type=jnp.float32)
    o_ref[...] = (h + mlp).astype(o_ref.dtype)


def rmsnorm_swiglu_residual(h2d, ln_w, wg, wu, wd, eps):
    rows, C = h2d.shape
    I = wg.shape[1]
    xi = h2d.dtype.itemsize
    per_row = 2 * (C + C) * xi + 4 * (C + 3 * I)           # tiles + f32 temps
    fixed = 2 * (2 * C * I + I * C + C) * wg.dtype.itemsize
    tm = _row_tile(rows, per_row, fixed)
    h_p, grid_n, rows_p = _pad_rows(h2d, tm)

    out = pl.pallas_call(
        functools.partial(_rmsnorm_swiglu_residual_kernel,
                          eps=float(eps), inv_d=1.0 / C),
        out_shape=jax.ShapeDtypeStruct((rows_p, C), h2d.dtype),
        grid_spec=pltpu.PrefetchScalarGridSpec(
            num_scalar_prefetch=0,
            grid=(grid_n,),
            in_specs=[
                pl.BlockSpec((tm, C), lambda i: (i, 0)),
                pl.BlockSpec((1, C), _const2),
                pl.BlockSpec((C, I), _const2),
                pl.BlockSpec((C, I), _const2),
                pl.BlockSpec((I, C), _const2),
            ],
            out_specs=pl.BlockSpec((tm, C), lambda i: (i, 0)),
        ),
        compiler_params=_COMPILER_PARAMS,
    )(h_p, ln_w.reshape(1, C), wg, wu, wd)
    return out[:rows] if rows_p != rows else out


# ------------------------------ RoPE helpers ----------------------------------
def _rope_cos_sin(seq_len, dim, base=10000.0):
    inv_freq = 1.0 / (base ** (jnp.arange(0, dim, 2, dtype=jnp.float32) / dim))
    t = jnp.arange(seq_len, dtype=jnp.float32)
    freqs = jnp.einsum("i,j->ij", t, inv_freq)
    emb = jnp.concatenate([freqs, freqs], axis=-1)         # (T, dim)
    return jnp.cos(emb), jnp.sin(emb)


def _rotate_half(x):
    half = x.shape[-1] // 2
    return jnp.concatenate([-x[..., half:], x[..., :half]], axis=-1)


# ------------------------------ Block forward ---------------------------------
def block_forward(x, params, cfg):
    B, T, C = x.shape
    H = cfg["n_head"]
    Hkv = cfg["n_kv_heads"]
    hd = C // H
    eps = cfg["rms_norm_eps"]
    rows = B * T
    x2d = x.reshape(rows, C)

    # Fused RMSNorm + Q/K/V projection (x streamed through VMEM once).
    q2d, k2d, v2d = rmsnorm_qkv(x2d, params["ln1_w"], params["wq"],
                                params["wk"], params["wv"], eps)
    q = q2d.reshape(B, T, H, hd)
    k = k2d.reshape(B, T, Hkv, hd)
    v = v2d.reshape(B, T, Hkv, hd)

    # TODO(synk): RoPE stays in plain JAX glue; it could be fused into the
    # attention kernel via pltpu.roll + a sign-folded sin table.
    cos, sin = _rope_cos_sin(T, hd, base=cfg.get("rope_theta", 10000.0))
    cos4 = cos.reshape(1, T, 1, hd)
    sin4 = sin.reshape(1, T, 1, hd)
    q = q * cos4 + _rotate_half(q) * sin4
    k = k * cos4 + _rotate_half(k) * sin4

    # (B, T, Hx, hd) -> (B, Hx, T, hd); GQA head broadcast happens in-kernel.
    q = q.transpose(0, 2, 1, 3)
    k = k.transpose(0, 2, 1, 3)
    v = v.transpose(0, 2, 1, 3)
    attn = causal_gqa_attention(q, k, v, scale=1.0 / math.sqrt(hd))
    attn2d = attn.transpose(0, 2, 1, 3).reshape(rows, C)

    # Fused output projection + residual add.
    h2d = oproj_residual(attn2d, params["wo"], x2d)

    # Fused RMSNorm + SwiGLU MLP + residual add.
    out2d = rmsnorm_swiglu_residual(h2d, params["ln2_w"], params["wg"],
                                    params["wu"], params["wd"], eps)
    return out2d.reshape(B, T, C)


# ---------------------------- Pure-JAX reference -------------------------------
def ref_block(x, params, cfg):
    B, T, C = x.shape
    H, Hkv = cfg["n_head"], cfg["n_kv_heads"]
    hd = C // H
    eps = cfg["rms_norm_eps"]
    hp = jax.lax.Precision.HIGHEST

    def rms(z, w):
        return z * jax.lax.rsqrt(jnp.mean(z * z, axis=-1, keepdims=True) + eps) * w

    h_ln = rms(x, params["ln1_w"])
    q = jnp.einsum("btc,cd->btd", h_ln, params["wq"], precision=hp).reshape(B, T, H, hd)
    k = jnp.einsum("btc,cd->btd", h_ln, params["wk"], precision=hp).reshape(B, T, Hkv, hd)
    v = jnp.einsum("btc,cd->btd", h_ln, params["wv"], precision=hp).reshape(B, T, Hkv, hd)
    cos, sin = _rope_cos_sin(T, hd, base=cfg.get("rope_theta", 10000.0))
    cos4, sin4 = cos.reshape(1, T, 1, hd), sin.reshape(1, T, 1, hd)
    q = q * cos4 + _rotate_half(q) * sin4
    k = k * cos4 + _rotate_half(k) * sin4
    rep = H // Hkv
    k = jnp.repeat(k, rep, axis=2)
    v = jnp.repeat(v, rep, axis=2)
    q, k, v = (z.transpose(0, 2, 1, 3) for z in (q, k, v))
    s = jnp.einsum("bhqd,bhkd->bhqk", q, k, precision=hp) / math.sqrt(hd)
    mask = jnp.triu(jnp.ones((T, T), dtype=bool), k=1)
    s = jnp.where(mask, -jnp.inf, s)
    p = jax.nn.softmax(s, axis=-1)
    o = jnp.einsum("bhqk,bhkd->bhqd", p, v, precision=hp)
    o = o.transpose(0, 2, 1, 3).reshape(B, T, C)
    attn = jnp.einsum("btc,cd->btd", o, params["wo"], precision=hp)
    h = x + attn
    h2 = rms(h, params["ln2_w"])
    g = jnp.einsum("btc,ci->bti", h2, params["wg"], precision=hp)
    u = jnp.einsum("btc,ci->bti", h2, params["wu"], precision=hp)
    mlp = jnp.einsum("bti,ic->btc", g * jax.nn.sigmoid(g) * u,
                     params["wd"], precision=hp)
    return h + mlp


if __name__ == "__main__":
    CFG = dict(block_size=64, vocab_size=256, n_layer=1, n_head=4, n_embd=32,
               intermediate_size=64, n_kv_heads=2, hidden_act="silu",
               rms_norm_eps=1e-6, rope_theta=10000.0)
    B, T = 2, 8
    C, I = CFG["n_embd"], CFG["intermediate_size"]
    H, Hkv = CFG["n_head"], CFG["n_kv_heads"]
    hd = C // H

    key = jax.random.PRNGKey(0)
    ks = jax.random.split(key, 8)
    params = {
        "ln1_w": jnp.ones((C,), jnp.float32),
        "ln2_w": jnp.ones((C,), jnp.float32),
        "wq": jax.random.normal(ks[0], (C, C), jnp.float32) * C ** -0.5,
        "wk": jax.random.normal(ks[1], (C, Hkv * hd), jnp.float32) * C ** -0.5,
        "wv": jax.random.normal(ks[2], (C, Hkv * hd), jnp.float32) * C ** -0.5,
        "wo": jax.random.normal(ks[3], (C, C), jnp.float32) * C ** -0.5,
        "wg": jax.random.normal(ks[4], (C, I), jnp.float32) * C ** -0.5,
        "wu": jax.random.normal(ks[5], (C, I), jnp.float32) * C ** -0.5,
        "wd": jax.random.normal(ks[6], (I, C), jnp.float32) * I ** -0.5,
    }
    x = jax.random.normal(ks[7], (B, T, C), jnp.float32)

    block_fwd = jax.jit(functools.partial(block_forward, cfg=CFG))
    out = jax.block_until_ready(block_fwd(x, params))

    ref = ref_block(x, params, CFG)
    assert out.shape == x.shape
    max_err = float(jnp.max(jnp.abs(out - ref)))
    assert jnp.allclose(out, ref, atol=5e-2, rtol=5e-2), f"max abs err {max_err}"
    print("KERNEL_OK")
</pallas_src>

<mosaic_0001>
module attributes {stable_mosaic.version = 11 : i64} {
  func.func @_rmsnorm_qkv_kernel(%arg0: i32, %arg1: memref<16x32xf32, #tpu.memory_space<vmem>>, %arg2: memref<1x32xf32, #tpu.memory_space<vmem>>, %arg3: memref<32x32xf32, #tpu.memory_space<vmem>>, %arg4: memref<32x16xf32, #tpu.memory_space<vmem>>, %arg5: memref<32x16xf32, #tpu.memory_space<vmem>>, %arg6: memref<16x32xf32, #tpu.memory_space<vmem>>, %arg7: memref<16x16xf32, #tpu.memory_space<vmem>>, %arg8: memref<16x16xf32, #tpu.memory_space<vmem>>) attributes {dimension_semantics = [#tpu.dimension_semantics<parallel>], iteration_bounds = array<i64: 1>, scalar_prefetch = 0 : i64, scratch_operands = 0 : i64, tpu.core_type = #tpu.core_type<tc>, window_params = [{transform_indices = @transform_0, window_bounds = array<i64: 16, 32>}, {pipeline_mode = #tpu.pipeline_mode<synchronous>, transform_indices = @transform_1, window_bounds = array<i64: 1, 32>}, {pipeline_mode = #tpu.pipeline_mode<synchronous>, transform_indices = @transform_2, window_bounds = array<i64: 32, 32>}, {pipeline_mode = #tpu.pipeline_mode<synchronous>, transform_indices = @transform_3, window_bounds = array<i64: 32, 16>}, {pipeline_mode = #tpu.pipeline_mode<synchronous>, transform_indices = @transform_4, window_bounds = array<i64: 32, 16>}, {transform_indices = @transform_5, window_bounds = array<i64: 16, 32>}, {transform_indices = @transform_6, window_bounds = array<i64: 16, 16>}, {transform_indices = @transform_7, window_bounds = array<i64: 16, 16>}]} {
    %c0 = arith.constant 0 : index
    %c0_0 = arith.constant 0 : index
    %0 = vector.load %arg1[%c0, %c0_0] : memref<16x32xf32, #tpu.memory_space<vmem>>, vector<16x32xf32>
    %c0_1 = arith.constant 0 : index
    %c0_2 = arith.constant 0 : index
    %1 = vector.load %arg2[%c0_1, %c0_2] : memref<1x32xf32, #tpu.memory_space<vmem>>, vector<1x32xf32>
    %2 = arith.mulf %0, %0 : vector<16x32xf32>
    %cst = arith.constant dense<0.000000e+00> : vector<16xf32>
    %3 = vector.multi_reduction <add>, %2, %cst [1] : vector<16x32xf32> to vector<16xf32>
    %4 = vector.shape_cast %3 : vector<16xf32> to vector<16x1xf32>
    %cst_3 = arith.constant 3.125000e-02 : f32
    %5 = vector.broadcast %cst_3 : f32 to vector<16x1xf32>
    %6 = arith.mulf %4, %5 : vector<16x1xf32>
    %cst_4 = arith.constant 9.99999997E-7 : f32
    %7 = vector.broadcast %cst_4 : f32 to vector<16x1xf32>
    %8 = arith.addf %6, %7 : vector<16x1xf32>
    %9 = math.rsqrt %8 : vector<16x1xf32>
    %10 = vector.broadcast %9 : vector<16x1xf32> to vector<16x32xf32>
    %11 = arith.mulf %0, %10 : vector<16x32xf32>
    %12 = vector.broadcast %1 : vector<1x32xf32> to vector<16x32xf32>
    %13 = arith.mulf %11, %12 : vector<16x32xf32>
    %c0_5 = arith.constant 0 : index
    %c0_6 = arith.constant 0 : index
    %14 = vector.load %arg3[%c0_5, %c0_6] : memref<32x32xf32, #tpu.memory_space<vmem>>, vector<32x32xf32>
    %cst_7 = arith.constant dense<0.000000e+00> : vector<16x32xf32>
    %15 = tpu.matmul %13, %14, %cst_7 {dimension_numbers = #tpu.dot_dimension_numbers<[1], [0], [0], [1], [0, 0, 1, 1], [], []>} : vector<16x32xf32>, vector<32x32xf32>, vector<16x32xf32> -> vector<16x32xf32>
    %c0_8 = arith.constant 0 : index
    %c0_9 = arith.constant 0 : index
    %16 = vector.load %arg6[%c0_8, %c0_9] : memref<16x32xf32, #tpu.memory_space<vmem>>, vector<16x32xf32>
    tpu.vector_store %arg6[%c0_8, %c0_9], %15 {strides = array<i32>} : memref<16x32xf32, #tpu.memory_space<vmem>>, vector<16x32xf32>,
    %c0_10 = arith.constant 0 : index
    %c0_11 = arith.constant 0 : index
    %17 = vector.load %arg4[%c0_10, %c0_11] : memref<32x16xf32, #tpu.memory_space<vmem>>, vector<32x16xf32>
    %cst_12 = arith.constant dense<0.000000e+00> : vector<16x16xf32>
    %18 = tpu.matmul %13, %17, %cst_12 {dimension_numbers = #tpu.dot_dimension_numbers<[1], [0], [0], [1], [0, 0, 1, 1], [], []>} : vector<16x32xf32>, vector<32x16xf32>, vector<16x16xf32> -> vector<16x16xf32>
    %c0_13 = arith.constant 0 : index
    %c0_14 = arith.constant 0 : index
    %19 = vector.load %arg7[%c0_13, %c0_14] : memref<16x16xf32, #tpu.memory_space<vmem>>, vector<16x16xf32>
    tpu.vector_store %arg7[%c0_13, %c0_14], %18 {strides = array<i32>} : memref<16x16xf32, #tpu.memory_space<vmem>>, vector<16x16xf32>,
    %c0_15 = arith.constant 0 : index
    %c0_16 = arith.constant 0 : index
    %20 = vector.load %arg5[%c0_15, %c0_16] : memref<32x16xf32, #tpu.memory_space<vmem>>, vector<32x16xf32>
    %cst_17 = arith.constant dense<0.000000e+00> : vector<16x16xf32>
    %21 = tpu.matmul %13, %20, %cst_17 {dimension_numbers = #tpu.dot_dimension_numbers<[1], [0], [0], [1], [0, 0, 1, 1], [], []>} : vector<16x32xf32>, vector<32x16xf32>, vector<16x16xf32> -> vector<16x16xf32>
    %c0_18 = arith.constant 0 : index
    %c0_19 = arith.constant 0 : index
    %22 = vector.load %arg8[%c0_18, %c0_19] : memref<16x16xf32, #tpu.memory_space<vmem>>, vector<16x16xf32>
    tpu.vector_store %arg8[%c0_18, %c0_19], %21 {strides = array<i32>} : memref<16x16xf32, #tpu.memory_space<vmem>>, vector<16x16xf32>,
    return
  }
  func.func @transform_0(%arg0: i32) -> (i32, i32) {
    %c0_i32 = arith.constant 0 : i32
    %c0_i32_0 = arith.constant 0 : i32
    return %arg0, %c0_i32 : i32, i32
  }
  func.func @transform_1(%arg0: i32) -> (i32, i32) {
    %c0_i32 = arith.constant 0 : i32
    %c0_i32_0 = arith.constant 0 : i32
    %c0_i32_1 = arith.constant 0 : i32
    return %c0_i32, %c0_i32_0 : i32, i32
  }
  func.func @transform_2(%arg0: i32) -> (i32, i32) {
    %c0_i32 = arith.constant 0 : i32
    %c0_i32_0 = arith.constant 0 : i32
    %c0_i32_1 = arith.constant 0 : i32
    return %c0_i32, %c0_i32_0 : i32, i32
  }
  func.func @transform_3(%arg0: i32) -> (i32, i32) {
    %c0_i32 = arith.constant 0 : i32
    %c0_i32_0 = arith.constant 0 : i32
    %c0_i32_1 = arith.constant 0 : i32
    return %c0_i32, %c0_i32_0 : i32, i32
  }
  func.func @transform_4(%arg0: i32) -> (i32, i32) {
    %c0_i32 = arith.constant 0 : i32
    %c0_i32_0 = arith.constant 0 : i32
    %c0_i32_1 = arith.constant 0 : i32
    return %c0_i32, %c0_i32_0 : i32, i32
  }
  func.func @transform_5(%arg0: i32) -> (i32, i32) {
    %c0_i32 = arith.constant 0 : i32
    %c0_i32_0 = arith.constant 0 : i32
    return %arg0, %c0_i32 : i32, i32
  }
  func.func @transform_6(%arg0: i32) -> (i32, i32) {
    %c0_i32 = arith.constant 0 : i32
    %c0_i32_0 = arith.constant 0 : i32
    return %arg0, %c0_i32 : i32, i32
  }
  func.func @transform_7(%arg0: i32) -> (i32, i32) {
    %c0_i32 = arith.constant 0 : i32
    %c0_i32_0 = arith.constant 0 : i32
    return %arg0, %c0_i32 : i32, i32
  }
}

module attributes {stable_mosaic.version = 11 : i64} {
  func.func @_gqa_attention_kernel(%arg0: i32, %arg1: memref<1x4x8x8xf32, #tpu.memory_space<vmem>>, %arg2: memref<1x2x8x8xf32, #tpu.memory_space<vmem>>, %arg3: memref<1x2x8x8xf32, #tpu.memory_space<vmem>>, %arg4: memref<1x4x8x8xf32, #tpu.memory_space<vmem>>) attributes {dimension_semantics = [#tpu.dimension_semantics<parallel>], iteration_bounds = array<i64: 2>, scalar_prefetch = 0 : i64, scratch_operands = 0 : i64, tpu.core_type = #tpu.core_type<tc>, window_params = [{transform_indices = @transform_0, window_bounds = array<i64: 1, 4, 8, 8>}, {transform_indices = @transform_1, window_bounds = array<i64: 1, 2, 8, 8>}, {transform_indices = @transform_2, window_bounds = array<i64: 1, 2, 8, 8>}, {transform_indices = @transform_3, window_bounds = array<i64: 1, 4, 8, 8>}]} {
    %c0 = arith.constant 0 : index
    %c0_0 = arith.constant 0 : index
    %c0_1 = arith.constant 0 : index
    %c0_2 = arith.constant 0 : index
    %0 = vector.load %arg1[%c0, %c0_0, %c0_1, %c0_2] : memref<1x4x8x8xf32, #tpu.memory_space<vmem>>, vector<1x4x8x8xf32>
    %1 = vector.shape_cast %0 : vector<1x4x8x8xf32> to vector<4x8x8xf32>
    %c0_3 = arith.constant 0 : index
    %c0_4 = arith.constant 0 : index
    %c0_5 = arith.constant 0 : index
    %c0_6 = arith.constant 0 : index
    %2 = vector.load %arg2[%c0_3, %c0_4, %c0_5, %c0_6] : memref<1x2x8x8xf32, #tpu.memory_space<vmem>>, vector<1x2x8x8xf32>
    %3 = vector.shape_cast %2 : vector<1x2x8x8xf32> to vector<2x8x8xf32>
    %c0_7 = arith.constant 0 : index
    %c0_8 = arith.constant 0 : index
    %c0_9 = arith.constant 0 : index
    %c0_10 = arith.constant 0 : index
    %4 = vector.load %arg3[%c0_7, %c0_8, %c0_9, %c0_10] : memref<1x2x8x8xf32, #tpu.memory_space<vmem>>, vector<1x2x8x8xf32>
    %5 = vector.shape_cast %4 : vector<1x2x8x8xf32> to vector<2x8x8xf32>
    %6 = vector.shape_cast %1 : vector<4x8x8xf32> to vector<2x2x8x8xf32>
    "tpu.trace_start"() <{level = 10 : i32, message = "grqd,gkd->grqk"}> : () -> ()
    %cst = arith.constant dense<0.000000e+00> : vector<2x2x8x8xf32>
    %7 = tpu.matmul %6, %3, %cst {dimension_numbers = #tpu.dot_dimension_numbers<[3], [2], [1, 2], [1], [0, 0, 0, 1, 0, 2, 1, 1], [0], [0]>} : vector<2x2x8x8xf32>, vector<2x8x8xf32>, vector<2x2x8x8xf32> -> vector<2x2x8x8xf32>
    "tpu.trace_stop"() : () -> ()
    %cst_11 = arith.constant 0.353553385 : f32
    %8 = vector.broadcast %cst_11 : f32 to vector<2x2x8x8xf32>
    %9 = arith.mulf %7, %8 : vector<2x2x8x8xf32>
    %10 = tpu.iota {dimensions = array<i32: 0>} : vector<8x8xi32>
    %11 = tpu.iota {dimensions = array<i32: 1>} : vector<8x8xi32>
    %12 = arith.cmpi sle, %11, %10 : vector<8x8xi32>
    %13 = vector.shape_cast %12 : vector<8x8xi1> to vector<1x1x8x8xi1>
    %cst_12 = arith.constant 0xFF800000 : f32
    %14 = vector.shape_cast %13 : vector<1x1x8x8xi1> to vector<1x1x8x8xi1>
    %15 = vector.broadcast %14 : vector<1x1x8x8xi1> to vector<2x2x8x8xi1>
    %16 = vector.broadcast %cst_12 : f32 to vector<2x2x8x8xf32>
    %17 = arith.select %15, %9, %16 : vector<2x2x8x8xi1>, vector<2x2x8x8xf32>
    %cst_13 = arith.constant dense<0xFF800000> : vector<2x2x8xf32>
    %18 = vector.multi_reduction <maximumf>, %17, %cst_13 [3] : vector<2x2x8x8xf32> to vector<2x2x8xf32>
    %19 = vector.shape_cast %18 : vector<2x2x8xf32> to vector<2x2x8x1xf32>
    %20 = vector.broadcast %19 : vector<2x2x8x1xf32> to vector<2x2x8x8xf32>
    %21 = arith.subf %17, %20 : vector<2x2x8x8xf32>
    %22 = math.exp %21 : vector<2x2x8x8xf32>
    %cst_14 = arith.constant dense<0.000000e+00> : vector<2x2x8xf32>
    %23 = vector.multi_reduction <add>, %22, %cst_14 [3] : vector<2x2x8x8xf32> to vector<2x2x8xf32>
    %24 = vector.shape_cast %23 : vector<2x2x8xf32> to vector<2x2x8x1xf32>
    "tpu.trace_start"() <{level = 10 : i32, message = "grqk,gkd->grqd"}> : () -> ()
    %cst_15 = arith.constant dense<0.000000e+00> : vector<2x2x8x8xf32>
    %25 = tpu.matmul %22, %5, %cst_15 {dimension_numbers = #tpu.dot_dimension_numbers<[3], [1], [1, 2], [2], [0, 0, 0, 1, 0, 2, 1, 2], [0], [0]>} : vector<2x2x8x8xf32>, vector<2x8x8xf32>, vector<2x2x8x8xf32> -> vector<2x2x8x8xf32>
    "tpu.trace_stop"() : () -> ()
    %26 = vector.broadcast %24 : vector<2x2x8x1xf32> to vector<2x2x8x8xf32>
    %27 = arith.divf %25, %26 : vector<2x2x8x8xf32>
    %28 = vector.shape_cast %27 : vector<2x2x8x8xf32> to vector<4x8x8xf32>
    %c0_16 = arith.constant 0 : index
    %c0_17 = arith.constant 0 : index
    %c0_18 = arith.constant 0 : index
    %c0_19 = arith.constant 0 : index
    %29 = vector.load %arg4[%c0_16, %c0_17, %c0_18, %c0_19] : memref<1x4x8x8xf32, #tpu.memory_space<vmem>>, vector<1x4x8x8xf32>
    %30 = vector.shape_cast %29 : vector<1x4x8x8xf32> to vector<4x8x8xf32>
    %31 = vector.shape_cast %28 : vector<4x8x8xf32> to vector<1x4x8x8xf32>
    tpu.vector_store %arg4[%c0_16, %c0_17, %c0_18, %c0_19], %31 {strides = array<i32>} : memref<1x4x8x8xf32, #tpu.memory_space<vmem>>, vector<1x4x8x8xf32>,
    return
  }
  func.func @transform_0(%arg0: i32) -> (i32, i32, i32, i32) {
    %c0_i32 = arith.constant 0 : i32
    %c0_i32_0 = arith.constant 0 : i32
    %c0_i32_1 = arith.constant 0 : i32
    %c0_i32_2 = arith.constant 0 : i32
    return %arg0, %c0_i32, %c0_i32_0, %c0_i32_1 : i32, i32, i32, i32
  }
  func.func @transform_1(%arg0: i32) -> (i32, i32, i32, i32) {
    %c0_i32 = arith.constant 0 : i32
    %c0_i32_0 = arith.constant 0 : i32
    %c0_i32_1 = arith.constant 0 : i32
    %c0_i32_2 = arith.constant 0 : i32
    return %arg0, %c0_i32, %c0_i32_0, %c0_i32_1 : i32, i32, i32, i32
  }
  func.func @transform_2(%arg0: i32) -> (i32, i32, i32, i32) {
    %c0_i32 = arith.constant 0 : i32
    %c0_i32_0 = arith.constant 0 : i32
    %c0_i32_1 = arith.constant 0 : i32
    %c0_i32_2 = arith.constant 0 : i32
    return %arg0, %c0_i32, %c0_i32_0, %c0_i32_1 : i32, i32, i32, i32
  }
  func.func @transform_3(%arg0: i32) -> (i32, i32, i32, i32) {
    %c0_i32 = arith.constant 0 : i32
    %c0_i32_0 = arith.constant 0 : i32
    %c0_i32_1 = arith.constant 0 : i32
    %c0_i32_2 = arith.constant 0 : i32
    return %arg0, %c0_i32, %c0_i32_0, %c0_i32_1 : i32, i32, i32, i32
  }
}

module attributes {stable_mosaic.version = 11 : i64} {
  func.func @_oproj_residual_kernel(%arg0: i32, %arg1: memref<16x32xf32, #tpu.memory_space<vmem>>, %arg2: memref<32x32xf32, #tpu.memory_space<vmem>>, %arg3: memref<16x32xf32, #tpu.memory_space<vmem>>, %arg4: memref<16x32xf32, #tpu.memory_space<vmem>>) attributes {dimension_semantics = [#tpu.dimension_semantics<parallel>], iteration_bounds = array<i64: 1>, scalar_prefetch = 0 : i64, scratch_operands = 0 : i64, tpu.core_type = #tpu.core_type<tc>, window_params = [{transform_indices = @transform_0, window_bounds = array<i64: 16, 32>}, {pipeline_mode = #tpu.pipeline_mode<synchronous>, transform_indices = @transform_1, window_bounds = array<i64: 32, 32>}, {transform_indices = @transform_2, window_bounds = array<i64: 16, 32>}, {transform_indices = @transform_3, window_bounds = array<i64: 16, 32>}]} {
    %c0 = arith.constant 0 : index
    %c0_0 = arith.constant 0 : index
    %0 = vector.load %arg1[%c0, %c0_0] : memref<16x32xf32, #tpu.memory_space<vmem>>, vector<16x32xf32>
    %c0_1 = arith.constant 0 : index
    %c0_2 = arith.constant 0 : index
    %1 = vector.load %arg2[%c0_1, %c0_2] : memref<32x32xf32, #tpu.memory_space<vmem>>, vector<32x32xf32>
    %cst = arith.constant dense<0.000000e+00> : vector<16x32xf32>
    %2 = tpu.matmul %0, %1, %cst {dimension_numbers = #tpu.dot_dimension_numbers<[1], [0], [0], [1], [0, 0, 1, 1], [], []>} : vector<16x32xf32>, vector<32x32xf32>, vector<16x32xf32> -> vector<16x32xf32>
    %c0_3 = arith.constant 0 : index
    %c0_4 = arith.constant 0 : index
    %3 = vector.load %arg3[%c0_3, %c0_4] : memref<16x32xf32, #tpu.memory_space<vmem>>, vector<16x32xf32>
    %4 = arith.addf %2, %3 : vector<16x32xf32>
    %c0_5 = arith.constant 0 : index
    %c0_6 = arith.constant 0 : index
    %5 = vector.load %arg4[%c0_5, %c0_6] : memref<16x32xf32, #tpu.memory_space<vmem>>, vector<16x32xf32>
    tpu.vector_store %arg4[%c0_5, %c0_6], %4 {strides = array<i32>} : memref<16x32xf32, #tpu.memory_space<vmem>>, vector<16x32xf32>,
    return
  }
  func.func @transform_0(%arg0: i32) -> (i32, i32) {
    %c0_i32 = arith.constant 0 : i32
    %c0_i32_0 = arith.constant 0 : i32
    return %arg0, %c0_i32 : i32, i32
  }
  func.func @transform_1(%arg0: i32) -> (i32, i32) {
    %c0_i32 = arith.constant 0 : i32
    %c0_i32_0 = arith.constant 0 : i32
    %c0_i32_1 = arith.constant 0 : i32
    return %c0_i32, %c0_i32_0 : i32, i32
  }
  func.func @transform_2(%arg0: i32) -> (i32, i32) {
    %c0_i32 = arith.constant 0 : i32
    %c0_i32_0 = arith.constant 0 : i32
    return %arg0, %c0_i32 : i32, i32
  }
  func.func @transform_3(%arg0: i32) -> (i32, i32) {
    %c0_i32 = arith.constant 0 : i32
    %c0_i32_0 = arith.constant 0 : i32
    return %arg0, %c0_i32 : i32, i32
  }
}

module attributes {stable_mosaic.version = 11 : i64} {
  func.func @_rmsnorm_swiglu_residual_kernel(%arg0: i32, %arg1: memref<16x32xf32, #tpu.memory_space<vmem>>, %arg2: memref<1x32xf32, #tpu.memory_space<vmem>>, %arg3: memref<32x64xf32, #tpu.memory_space<vmem>>, %arg4: memref<32x64xf32, #tpu.memory_space<vmem>>, %arg5: memref<64x32xf32, #tpu.memory_space<vmem>>, %arg6: memref<16x32xf32, #tpu.memory_space<vmem>>) attributes {dimension_semantics = [#tpu.dimension_semantics<parallel>], iteration_bounds = array<i64: 1>, scalar_prefetch = 0 : i64, scratch_operands = 0 : i64, tpu.core_type = #tpu.core_type<tc>, window_params = [{transform_indices = @transform_0, window_bounds = array<i64: 16, 32>}, {pipeline_mode = #tpu.pipeline_mode<synchronous>, transform_indices = @transform_1, window_bounds = array<i64: 1, 32>}, {pipeline_mode = #tpu.pipeline_mode<synchronous>, transform_indices = @transform_2, window_bounds = array<i64: 32, 64>}, {pipeline_mode = #tpu.pipeline_mode<synchronous>, transform_indices = @transform_3, window_bounds = array<i64: 32, 64>}, {pipeline_mode = #tpu.pipeline_mode<synchronous>, transform_indices = @transform_4, window_bounds = array<i64: 64, 32>}, {transform_indices = @transform_5, window_bounds = array<i64: 16, 32>}]} {
    %c0 = arith.constant 0 : index
    %c0_0 = arith.constant 0 : index
    %0 = vector.load %arg1[%c0, %c0_0] : memref<16x32xf32, #tpu.memory_space<vmem>>, vector<16x32xf32>
    %c0_1 = arith.constant 0 : index
    %c0_2 = arith.constant 0 : index
    %1 = vector.load %arg2[%c0_1, %c0_2] : memref<1x32xf32, #tpu.memory_space<vmem>>, vector<1x32xf32>
    %2 = arith.mulf %0, %0 : vector<16x32xf32>
    %cst = arith.constant dense<0.000000e+00> : vector<16xf32>
    %3 = vector.multi_reduction <add>, %2, %cst [1] : vector<16x32xf32> to vector<16xf32>
    %4 = vector.shape_cast %3 : vector<16xf32> to vector<16x1xf32>
    %cst_3 = arith.constant 3.125000e-02 : f32
    %5 = vector.broadcast %cst_3 : f32 to vector<16x1xf32>
    %6 = arith.mulf %4, %5 : vector<16x1xf32>
    %cst_4 = arith.constant 9.99999997E-7 : f32
    %7 = vector.broadcast %cst_4 : f32 to vector<16x1xf32>
    %8 = arith.addf %6, %7 : vector<16x1xf32>
    %9 = math.rsqrt %8 : vector<16x1xf32>
    %10 = vector.broadcast %9 : vector<16x1xf32> to vector<16x32xf32>
    %11 = arith.mulf %0, %10 : vector<16x32xf32>
    %12 = vector.broadcast %1 : vector<1x32xf32> to vector<16x32xf32>
    %13 = arith.mulf %11, %12 : vector<16x32xf32>
    %c0_5 = arith.constant 0 : index
    %c0_6 = arith.constant 0 : index
    %14 = vector.load %arg3[%c0_5, %c0_6] : memref<32x64xf32, #tpu.memory_space<vmem>>, vector<32x64xf32>
    %cst_7 = arith.constant dense<0.000000e+00> : vector<16x64xf32>
    %15 = tpu.matmul %13, %14, %cst_7 {dimension_numbers = #tpu.dot_dimension_numbers<[1], [0], [0], [1], [0, 0, 1, 1], [], []>} : vector<16x32xf32>, vector<32x64xf32>, vector<16x64xf32> -> vector<16x64xf32>
    %c0_8 = arith.constant 0 : index
    %c0_9 = arith.constant 0 : index
    %16 = vector.load %arg4[%c0_8, %c0_9] : memref<32x64xf32, #tpu.memory_space<vmem>>, vector<32x64xf32>
    %cst_10 = arith.constant dense<0.000000e+00> : vector<16x64xf32>
    %17 = tpu.matmul %13, %16, %cst_10 {dimension_numbers = #tpu.dot_dimension_numbers<[1], [0], [0], [1], [0, 0, 1, 1], [], []>} : vector<16x32xf32>, vector<32x64xf32>, vector<16x64xf32> -> vector<16x64xf32>
    %cst_11 = arith.constant 0.000000e+00 : f32
    %18 = vector.broadcast %cst_11 : f32 to vector<16x64xf32>
    %19 = arith.subf %18, %15 : vector<16x64xf32>
    %20 = math.exp %19 : vector<16x64xf32>
    %cst_12 = arith.constant 1.000000e+00 : f32
    %21 = vector.broadcast %cst_12 : f32 to vector<16x64xf32>
    %22 = arith.addf %21, %20 : vector<16x64xf32>
    %cst_13 = arith.constant 1.000000e+00 : f32
    %23 = vector.broadcast %cst_13 : f32 to vector<16x64xf32>
    %24 = arith.divf %23, %22 : vector<16x64xf32>
    %25 = arith.mulf %15, %24 : vector<16x64xf32>
    %26 = arith.mulf %25, %17 : vector<16x64xf32>
    %c0_14 = arith.constant 0 : index
    %c0_15 = arith.constant 0 : index
    %27 = vector.load %arg5[%c0_14, %c0_15] : memref<64x32xf32, #tpu.memory_space<vmem>>, vector<64x32xf32>
    %cst_16 = arith.constant dense<0.000000e+00> : vector<16x32xf32>
    %28 = tpu.matmul %26, %27, %cst_16 {dimension_numbers = #tpu.dot_dimension_numbers<[1], [0], [0], [1], [0, 0, 1, 1], [], []>} : vector<16x64xf32>, vector<64x32xf32>, vector<16x32xf32> -> vector<16x32xf32>
    %29 = arith.addf %0, %28 : vector<16x32xf32>
    %c0_17 = arith.constant 0 : index
    %c0_18 = arith.constant 0 : index
    %30 = vector.load %arg6[%c0_17, %c0_18] : memref<16x32xf32, #tpu.memory_space<vmem>>, vector<16x32xf32>
    tpu.vector_store %arg6[%c0_17, %c0_18], %29 {strides = array<i32>} : memref<16x32xf32, #tpu.memory_space<vmem>>, vector<16x32xf32>,
    return
  }
  func.func @transform_0(%arg0: i32) -> (i32, i32) {
    %c0_i32 = arith.constant 0 : i32
    %c0_i32_0 = arith.constant 0 : i32
    return %arg0, %c0_i32 : i32, i32
  }
  func.func @transform_1(%arg0: i32) -> (i32, i32) {
    %c0_i32 = arith.constant 0 : i32
    %c0_i32_0 = arith.constant 0 : i32
    %c0_i32_1 = arith.constant 0 : i32
    return %c0_i32, %c0_i32_0 : i32, i32
  }
  func.func @transform_2(%arg0: i32) -> (i32, i32) {
    %c0_i32 = arith.constant 0 : i32
    %c0_i32_0 = arith.constant 0 : i32
    %c0_i32_1 = arith.constant 0 : i32
    return %c0_i32, %c0_i32_0 : i32, i32
  }
  func.func @transform_3(%arg0: i32) -> (i32, i32) {
    %c0_i32 = arith.constant 0 : i32
    %c0_i32_0 = arith.constant 0 : i32
    %c0_i32_1 = arith.constant 0 : i32
    return %c0_i32, %c0_i32_0 : i32, i32
  }
  func.func @transform_4(%arg0: i32) -> (i32, i32) {
    %c0_i32 = arith.constant 0 : i32
    %c0_i32_0 = arith.constant 0 : i32
    %c0_i32_1 = arith.constant 0 : i32
    return %c0_i32, %c0_i32_0 : i32, i32
  }
  func.func @transform_5(%arg0: i32) -> (i32, i32) {
    %c0_i32 = arith.constant 0 : i32
    %c0_i32_0 = arith.constant 0 : i32
    return %arg0, %c0_i32 : i32, i32
  }
}

</mosaic_0001>

<bundles_post_ra>
// kernel: block_forward.4
= control target key start
LH: loop header
LB: loop body
LE: loop exit
PB: predicated region body
PF: predicated region fallthrough
CT: control target
= control target key end

     0   :  { %vm28_vm0 = vcmask 261120   ;;  %vm128_vm7 = vcmask 130048   ;;  %s310_s0 = inlined_call_operand.vmem [shape: f32[16,32], index: 0, kind: input, shape index: {}]   ;;  %s311_s1 = inlined_call_operand.vmem [shape: f32[1,32], index: 1, kind: input, shape index: {}]   ;;  %s312_s2 = inlined_call_operand.vmem [shape: f32[32,32], index: 2, kind: input, shape index: {}]   ;;  %s313_s3 = inlined_call_operand.vmem [shape: f32[32,16], index: 3, kind: input, shape index: {}]   ;;  %s314_s4 = inlined_call_operand.vmem [shape: f32[32,16], index: 4, kind: input, shape index: {}]   ;;  %s315_s5 = inlined_call_operand.vmem [shape: f32[16,32], index: 5, kind: output, shape index: {0}]   ;;  %s316_s6 = inlined_call_operand.vmem [shape: f32[16,16], index: 6, kind: output, shape index: {1}]   ;;  %s317_s7 = inlined_call_operand.vmem [shape: f32[16,16], index: 7, kind: output, shape index: {2}]  }
   0x1   :  { %v230_v0 = vld [vmem:[%s310_s0] sm:$0xff]  ;;  %v237_v2 = vld [vmem:[%s310_s0 + $0x8] sm:$0xff]  ;;  %v69_v6 = vld [vmem:[%s312_s2 + $0x18] sm:$0xff] }
   0x2   :  { %v26_v1 = vmul.f32 %v230_v0, %v230_v0  ;;  %v27_v4 = vmul.f32 %v237_v2, %v237_v2  ;;  %v104_v7 = vld [vmem:[%s313_s3 + $0x18] sm:$0xff]  ;;  %88 = vmatpush.msra.mxu0 %v69_v6  ;;  %v68_v9 = vld [vmem:[%s312_s2 + $0x10] sm:$0xff]  ;;  %178 = vmatpush.msra.mxu3 %v69_v6  ;;  %v67_v12 = vld [vmem:[%s312_s2 + $0x8] sm:$0xff] }
   0x3   :  { %v134_v8 = vld [vmem:[%s314_s4 + $0x18] sm:$0xff]  ;;  %117 = vmatpush.msra.mxu1 %v104_v7  ;;  %v103_v10 = vld [vmem:[%s313_s3 + $0x10] sm:$0xff]  ;;  %v102_v13 = vld [vmem:[%s313_s3 + $0x8] sm:$0xff] }
   0x4   :  { %v29_v3 = vsel %vm28_vm0, %v26_v1, 0.0  ;;  %v32_v5 = vsel %vm28_vm0, %v27_v4, 0.0  ;;  %147 = vmatpush.msra.mxu2 %v134_v8  ;;  %v133_v11 = vld [vmem:[%s314_s4 + $0x10] sm:$0xff]  ;;  %89 = vmatpush.msra.mxu0 %v68_v9  ;;  %v132_v14 = vld [vmem:[%s314_s4 + $0x8] sm:$0xff]  ;;  %v66_v15 = vld [vmem:[%s312_s2] sm:$0xff] }
   0x5   :  { %30 = vadd.xlane.f32.xlu0 %v29_v3  ;;  %118 = vmatpush.msra.mxu1 %v103_v10  ;;  %v101_v16 = vld [vmem:[%s313_s3] sm:$0xff] }
   0x6   :  { %148 = vmatpush.msra.mxu2 %v133_v11  ;;  %179 = vmatpush.msra.mxu3 %v68_v9  ;;  %v131_v17 = vld [vmem:[%s314_s4] sm:$0xff] }
   0x7   :  { %90 = vmatpush.msra.mxu0 %v67_v12  ;;  %119 = vmatpush.msra.mxu1 %v102_v13  ;;  %v182_v32 = vld [vmem:[%s311_s1] ss:$0 sm:$0xff] }
   0x8   :  { %149 = vmatpush.msra.mxu2 %v132_v14  ;;  %180 = vmatpush.msra.mxu3 %v67_v12 }
   0x9   :  { %91 = vmatpush.msra.mxu0 %v66_v15  ;;  %120 = vmatpush.msra.mxu1 %v101_v16 }
   0xa   :  { %150 = vmatpush.msra.mxu2 %v131_v17  ;;  %181 = vmatpush.msra.mxu3 %v66_v15 }
   0xd   :  { %33 = vadd.xlane.f32.xlu0 %v32_v5 }
  0x78   :  { %v31_v18 = vpop.xlane.xlu0 %30 }
  0x79   :  { %v35_v19 = vmul.f32 0.03125, %v31_v18 }
  0x7b   :  { %v37_v20 = vadd.f32 1e-06, %v35_v19 }
  0x7d   :  { %183 = vrsqrt.f32 %v37_v20  ;;  %vm45_vm2 = vweird.f32 %v37_v20 }
  0x80   :  { %v34_v21 = vpop.xlane.xlu0 %33 }
  0x81   :  { %v36_v22 = vmul.f32 0.03125, %v34_v21 }
  0x83   :  { %v184_v23 = vpop.eup %183  ;;  %v38_v24 = vadd.f32 1e-06, %v36_v22 }
  0x84   :  { %v40_v25 = vmul.f32 %v184_v23, %v37_v20  ;;  %vm46_vm1 = vweird.f32 %v184_v23 }
  0x85   :  { %185 = vrsqrt.f32 %v38_v24  ;;  %vm47_vm3 = vmor %vm45_vm2, %vm46_vm1  ;;  %vm55_vm5 = vweird.f32 %v38_v24 }
  0x86   :  { %v41_v26 = vmul.f32 %v184_v23, %v40_v25 }
  0x88   :  { %v42_v27 = vmul.f32 0.5, %v41_v26 }
  0x8a   :  { %v43_v28 = vsub.f32 1.5, %v42_v27 }
  0x8b   :  { %v186_v29 = vpop.eup %185 }
  0x8c   :  { %v44_v30 = vmul.f32 %v184_v23, %v43_v28  ;;  %v50_v31 = vmul.f32 %v186_v29, %v38_v24  ;;  %vm56_vm4 = vweird.f32 %v186_v29 }
  0x8d   :  { %vm57_vm6 = vmor %vm55_vm5, %vm56_vm4 }
  0x8e   :  { %v51_v33 = vmul.f32 %v186_v29, %v50_v31  ;;  %v48_v34 = vsel %vm47_vm3, %v184_v23, %v44_v30 }
  0x8f   :  { %v59_v35 = vmul.f32 %v48_v34, %v230_v0 }
  0x90   :  { %v52_v36 = vmul.f32 0.5, %v51_v33 }
  0x91   :  { %v64_v37 = vmul.f32 %v182_v32, %v59_v35 }
  0x92   :  { %v53_v38 = vsub.f32 1.5, %v52_v36 }
  0x93   :  { %172 = vmatmul.msk.f32.vlgmr.msra.gmra.mxu0 %vm28_vm0, %v64_v37  ;;  %174 = vmatmul.msk.f32.vlgmr.msra.gmra.mxu1 %vm28_vm0, %v64_v37 }
  0x94   :  { %v54_v39 = vmul.f32 %v186_v29, %v53_v38  ;;  %176 = vmatmul.msk.f32.vlgmr.msra.gmra.mxu2 %vm28_vm0, %v64_v37 }
  0x96   :  { %v58_v40 = vsel %vm57_vm6, %v186_v29, %v54_v39 }
  0x97   :  { %v60_v41 = vmul.f32 %v58_v40, %v237_v2 }
  0x99   :  { %v65_v42 = vmul.f32 %v182_v32, %v60_v41 }
  0x9b   :  { %173 = vmatmul.msk.f32.vlgmr.msra.gmra.mxu3 %vm28_vm0, %v65_v42  ;;  %175 = vmatmul.msk.f32.gmra.mxu1 %vm28_vm0, %v65_v42 }
  0x9c   :  { %177 = vmatmul.msk.f32.gmra.mxu2 %vm28_vm0, %v65_v42 }
 0x110   :  { %v93_v43 = vpop.f32.mrf.mxu0  ;;  %v122_v44 = vpop.f32.mrf.mxu1 }
 0x111   :  { %99 = vst.msk [vmem:[%s315_s5] sm:$0xff] %vm28_vm0, %v93_v43 }
 0x112   :  { %129 = vst.msk [vmem:[%s316_s6] sm:$0xff] %vm128_vm7, %v122_v44 }
 0x117   :  { %v152_v45 = vpop.f32.mrf.mxu2 }
 0x118   :  { %158 = vst.msk [vmem:[%s317_s7] sm:$0xff] %vm128_vm7, %v152_v45  ;;  %v125_v46 = vpop.f32.mrf.mxu1 }
 0x119   :  { %130 = vst.msk [vmem:[%s316_s6 + $0x8] sm:$0xff] %vm128_vm7, %v125_v46 }
 0x11e   :  { %v96_v47 = vpop.f32.mrf.mxu3 }
 0x11f   :  { %100 = vst.msk [vmem:[%s315_s5 + $0x8] sm:$0xff] %vm28_vm0, %v96_v47  ;;  %v155_v48 = vpop.f32.mrf.mxu2 }
 0x120   :  { %159 = vst.msk [vmem:[%s317_s7 + $0x8] sm:$0xff] %vm128_vm7, %v155_v48 }

// kernel: block_forward.6
= control target key start
LH: loop header
LB: loop body
LE: loop exit
PB: predicated region body
PF: predicated region fallthrough
CT: control target
= control target key end

     0   :  { %vm22_vm0 = vcmask 261120   ;;  %s114_s1 = inlined_call_operand.vmem [shape: f32[32,32], index: 1, kind: input, shape index: {}]   ;;  %s115_s0 = inlined_call_operand.vmem [shape: f32[16,32], index: 0, kind: input, shape index: {}]   ;;  %s116_s2 = inlined_call_operand.vmem [shape: f32[16,32], index: 2, kind: input, shape index: {}]   ;;  %s117_s3 = inlined_call_operand.vmem [shape: f32[16,32], index: 3, kind: output, shape index: {}]  }
   0x1   :  { %v19_v0 = vld [vmem:[%s114_s1 + $0x18] sm:$0xff]  ;;  %v18_v1 = vld [vmem:[%s114_s1 + $0x10] sm:$0xff]  ;;  %v17_v2 = vld [vmem:[%s114_s1 + $0x8] sm:$0xff] }
   0x2   :  { %41 = vmatpush.msra.mxu0 %v19_v0  ;;  %60 = vmatpush.msra.mxu1 %v19_v0  ;;  %v16_v3 = vld [vmem:[%s114_s1] sm:$0xff]  ;;  %v15_v5 = vld [vmem:[%s115_s0 + $0x8] sm:$0xff] }
   0x3   :  { %v14_v4 = vld [vmem:[%s115_s0] sm:$0xff]  ;;  %v21_v7 = vld [vmem:[%s116_s2 + $0x8] sm:$0xff] }
   0x4   :  { %42 = vmatpush.msra.mxu0 %v18_v1  ;;  %61 = vmatpush.msra.mxu1 %v18_v1  ;;  %v20_v6 = vld [vmem:[%s116_s2] sm:$0xff] }
   0x6   :  { %43 = vmatpush.msra.mxu0 %v17_v2  ;;  %62 = vmatpush.msra.mxu1 %v17_v2 }
   0x8   :  { %44 = vmatpush.msra.mxu0 %v16_v3  ;;  %63 = vmatpush.msra.mxu1 %v16_v3 }
   0x9   :  { %58 = vmatmul.msk.f32.vlgmr.msra.gmra.mxu0 %vm22_vm0, %v14_v4  ;;  %59 = vmatmul.msk.f32.vlgmr.msra.gmra.mxu1 %vm22_vm0, %v15_v5 }
  0x86   :  { %v46_v8 = vpop.f32.mrf.mxu0  ;;  %v49_v9 = vpop.f32.mrf.mxu1 }
  0x87   :  { %v47_v10 = vadd.f32 %v46_v8, %v20_v6  ;;  %v50_v11 = vadd.f32 %v49_v9, %v21_v7 }
  0x89   :  { %52 = vst.msk [vmem:[%s117_s3] sm:$0xff] %vm22_vm0, %v47_v10 }
  0x8a   :  { %53 = vst.msk [vmem:[%s117_s3 + $0x8] sm:$0xff] %vm22_vm0, %v50_v11 }

// kernel: block_forward.5
= control target key start
LH: loop header
LB: loop body
LE: loop exit
PB: predicated region body
PF: predicated region fallthrough
CT: control target
= control target key end

     0   :  { %s617_s12 = smov 0   ;;  %s684_s0 = inlined_call_operand.vmem [shape: f32[2,4,8,8], index: 0, kind: input, shape index: {}]   ;;  %s685_s1 = inlined_call_operand.vmem [shape: f32[2,2,8,8], index: 1, kind: input, shape index: {}]   ;;  %s686_s2 = inlined_call_operand.vmem [shape: f32[2,2,8,8], index: 2, kind: input, shape index: {}]   ;;  %s687_s3 = inlined_call_operand.vmem [shape: f32[2,4,8,8], index: 3, kind: output, shape index: {}]  }
   0x1 LB: > { %s536_s13 = sadd.s32 4294967295, %s595_s12   ;;  %p540_p0 = scmp.ge.s32.totalorder %s595_s12, 1  ;;  %s595_s12 = sphi %s617_s12, %s13_s12  }
   0x2   : > { %p157_p1 = scmp.lt.s32.totalorder %s595_s12, 3 }
   0x4   : > { %p158_p2 = pnand %p540_p0, %p157_p1 }
   0x5   : > { %p191_p3 = scmp.lt.s32.totalorder (!%p158_p2), %s536_s13, 1 }
   0x6   : > { %161 = sbr.rel (%p158_p2) target bundleno = 428 (0x1ac), region = 32 }
   0xb   : > { %s689_s13 = smov (!%p191_p3, %s536_s13), 1  ;;  %vm219_vm0 = vcmask 64512   ;;  %v288_v6 = vlaneseq }
   0xc   : > { %s561_s14 = sshll.u32 %s689_s13, 5  ;;  %s562_s15 = sshll.u32 %s689_s13, 4 }
   0xd   : > { %s200_s18 = scalar_lea.vmem %s685_s1, %s562_s15  ;;  %s195_s21 = scalar_lea.vmem %s684_s0, %s561_s14  ;;  %v289_v7 = vshrl.u32 %v288_v6, 7  ;;  %v291_v8 = vand.u32 127, %v288_v6 }
   0xe   : > { %v215_v0 = vld [vmem:[%s200_s18] sm:$0xff]  ;;  %v216_v1 = vld [vmem:[%s200_s18 + $0x8] sm:$0xff]  ;;  %v213_v3 = vld [vmem:[%s195_s21 + $0x10] sm:$0xff]  ;;  %s205_s24 = scalar_lea.vmem %s686_s2, %s562_s15  ;;  %s671_s27 = scalar_lea.vmem %s687_s3, %s561_s14 }
   0xf   : > { %549 = vmatpush.xpose.msk.msra.mxu0 %vm219_vm0, %v215_v0  ;;  %v211_v2 = vld [vmem:[%s195_s21] sm:$0xff]  ;;  %552 = vmatpush.xpose.msk.msra.mxu1 %vm219_vm0, %v216_v1  ;;  %v212_v4 = vld [vmem:[%s195_s21 + $0x8] sm:$0xff]  ;;  %v214_v5 = vld [vmem:[%s195_s21 + $0x18] sm:$0xff]  ;;  %vm292_vm1 = vcmp.le.s32.totalorder %v291_v8, %v289_v7 }
  0x10   : > { %v217_v25 = vld [vmem:[%s205_s24] sm:$0xff]  ;;  %v218_v26 = vld [vmem:[%s205_s24 + $0x8] sm:$0xff] }
  0x11   : > { %356 = vmatpush.msra.mxu2 %v217_v25  ;;  %385 = vmatpush.msra.mxu3 %v218_v26 }
  0x12   : > { %550 = vmatmul.msk.f32.vlgmr.msra.gmra.mxu0 %vm219_vm0, %v211_v2  ;;  %553 = vmatmul.msk.f32.vlgmr.msra.gmra.mxu1 %vm219_vm0, %v213_v3 }
  0x1a   : > { %551 = vmatmul.msk.f32.gmra.mxu0 %vm219_vm0, %v212_v4  ;;  %554 = vmatmul.msk.f32.gmra.mxu1 %vm219_vm0, %v214_v5 }
  0x8f   : > { %v246_v9 = vpop.f32.mrf.mxu0  ;;  %v278_v10 = vpop.f32.mrf.mxu1 }
  0x90   : > { %v284_v11 = vmul.f32 0.35355338, %v246_v9  ;;  %v286_v13 = vmul.f32 0.35355338, %v278_v10 }
  0x92   : > { %v295_v12 = vsel %vm292_vm1, %v284_v11, -inf  ;;  %v297_v15 = vsel %vm292_vm1, %v286_v13, -inf }
  0x93   : > { %v299_v14 = vsel %vm219_vm0, %v295_v12, -inf  ;;  %v305_v19 = vsel %vm219_vm0, %v297_v15, -inf }
  0x94   : > { %300 = vmax.xlane.f32.xlu0 %v299_v14 }
  0x97   : > { %v249_v16 = vpop.f32.mrf.mxu0  ;;  %v281_v17 = vpop.f32.mrf.mxu1 }
  0x98   : > { %v285_v18 = vmul.f32 0.35355338, %v249_v16  ;;  %v287_v21 = vmul.f32 0.35355338, %v281_v17 }
  0x9a   : > { %v296_v20 = vsel %vm292_vm1, %v285_v18, -inf  ;;  %v298_v23 = vsel %vm292_vm1, %v287_v21, -inf }
  0x9b   : > { %v302_v22 = vsel %vm219_vm0, %v296_v20, -inf  ;;  %v308_v24 = vsel %vm219_vm0, %v298_v23, -inf }
  0x9c   : > { %306 = vmax.xlane.f32.xlu0 %v305_v19  ;;  %303 = vmax.xlane.f32.xlu1 %v302_v22 }
  0xa4   : > { %309 = vmax.xlane.f32.xlu1 %v308_v24 }
 0x107   : > { %v301_v27 = vpop.xlane.xlu0 %300 }
 0x108   : > { %v311_v28 = vsub.f32 %v295_v12, %v301_v27 }
 0x10a   : > { %v315_v29 = vmul.f32 1.442695, %v311_v28 }
 0x10c   : > { %573 = vpow2.f32 %v315_v29 }
 0x10f   : > { %v307_v30 = vpop.xlane.xlu0 %306  ;;  %v304_v31 = vpop.xlane.xlu1 %303 }
 0x110   : > { %v313_v32 = vsub.f32 %v297_v15, %v307_v30  ;;  %v312_v33 = vsub.f32 %v296_v20, %v304_v31 }
 0x112   : > { %v574_v34 = vpop.eup %573  ;;  %v319_v35 = vmul.f32 1.442695, %v313_v32  ;;  %v317_v36 = vmul.f32 1.442695, %v312_v33 }
 0x113   : > { %555 = vmatmul.msk.f32.vlgmr.msra.gmra.mxu2 %vm219_vm0, %v574_v34  ;;  %v323_v37 = vsel %vm219_vm0, %v574_v34, 0.0 }
 0x114   : > { %575 = vpow2.f32 %v319_v35  ;;  %324 = vadd.xlane.f32.xlu2 %v323_v37 }
 0x115   : > { %577 = vpow2.f32 %v317_v36 }
 0x117   : > { %v310_v38 = vpop.xlane.xlu1 %309 }
 0x118   : > { %v314_v39 = vsub.f32 %v298_v23, %v310_v38 }
 0x11a   : > { %v576_v40 = vpop.eup %575  ;;  %v321_v41 = vmul.f32 1.442695, %v314_v39 }
 0x11b   : > { %v578_v42 = vpop.eup %577  ;;  %557 = vmatmul.msk.f32.vlgmr.msra.gmra.mxu3 %vm219_vm0, %v576_v40  ;;  %v329_v43 = vsel %vm219_vm0, %v576_v40, 0.0 }
 0x11c   : > { %579 = vpow2.f32 %v321_v41  ;;  %556 = vmatmul.msk.f32.gmra.mxu2 %vm219_vm0, %v578_v42  ;;  %330 = vadd.xlane.f32.xlu0 %v329_v43  ;;  %v326_v44 = vsel %vm219_vm0, %v578_v42, 0.0 }
 0x11d   : > { %327 = vadd.xlane.f32.xlu2 %v326_v44 }
 0x122   : > { %v580_v45 = vpop.eup %579 }
 0x123   : > { %558 = vmatmul.msk.f32.gmra.mxu3 %vm219_vm0, %v580_v45  ;;  %v332_v46 = vsel %vm219_vm0, %v580_v45, 0.0 }
 0x124   : > { %333 = vadd.xlane.f32.xlu1 %v332_v46 }
 0x187   : > { %v325_v47 = vpop.xlane.xlu2 %324 }
 0x188   : > { %581 = vrcp.f32 %v325_v47  ;;  %v404_v53 = vand.u32 2147483648, %v325_v47  ;;  %v402_v55 = vand.u32 2147483647, %v325_v47  ;;  %vm398_vm3 = vweird.f32 %v325_v47 }
 0x18a   : > { %v405_v58 = vor.u32 1.1754944e-38, %v404_v53  ;;  %vm403_vm5 = vcmp.eq.f32.partialorder %v402_v55, 8.507059e+37 }
 0x18e   : > { %v582_v48 = vpop.eup %581 }
 0x18f   : > { %v394_v49 = vmul.f32 %v582_v48, %v325_v47  ;;  %v331_v50 = vpop.xlane.xlu0 %330  ;;  %vm399_vm2 = vweird.f32 %v582_v48 }
 0x190   : > { %583 = vrcp.f32 %v331_v50  ;;  %v328_v51 = vpop.xlane.xlu2 %327  ;;  %vm400_vm4 = vmor %vm398_vm3, %vm399_vm2  ;;  %v434_v4 = vand.u32 2147483648, %v331_v50  ;;  %v432_v8 = vand.u32 2147483647, %v331_v50  ;;  %vm428_vm8 = vweird.f32 %v331_v50 }
 0x191   : > { %v395_v52 = vsub.f32 1.0, %v394_v49  ;;  %585 = vrcp.f32 %v328_v51  ;;  %v419_v7 = vand.u32 2147483648, %v328_v51  ;;  %v417_v10 = vand.u32 2147483647, %v328_v51 }
 0x192   : > { %vm413_vm9 = vweird.f32 %v328_v51  ;;  %v435_v15 = vor.u32 1.1754944e-38, %v434_v4  ;;  %vm433_vm12 = vcmp.eq.f32.partialorder %v432_v8, 8.507059e+37 }
 0x193   : > { %v396_v54 = vmul.f32 %v582_v48, %v395_v52  ;;  %v420_v17 = vor.u32 1.1754944e-38, %v419_v7  ;;  %vm418_vm13 = vcmp.eq.f32.partialorder %v417_v10, 8.507059e+37 }
 0x195   : > { %v397_v56 = vadd.f32 %v582_v48, %v396_v54 }
 0x196   : > { %v584_v57 = vpop.eup %583  ;;  %v358_v61 = vpop.f32.mrf.mxu2 }
 0x197   : > { %v586_v59 = vpop.eup %585  ;;  %v424_v60 = vmul.f32 %v584_v57, %v331_v50  ;;  %v401_v62 = vsel %vm400_vm4, %v582_v48, %v397_v56  ;;  %v334_v63 = vpop.xlane.xlu1 %333  ;;  %vm429_vm6 = vweird.f32 %v584_v57 }
 0x198   : > { %v409_v0 = vmul.f32 %v586_v59, %v328_v51  ;;  %v406_v1 = vsel %vm403_vm5, %v405_v58, %v401_v62  ;;  %587 = vrcp.f32 %v334_v63  ;;  %vm414_vm7 = vweird.f32 %v586_v59  ;;  %vm430_vm10 = vmor %vm428_vm8, %vm429_vm6 }
 0x199   : > { %v425_v2 = vsub.f32 1.0, %v424_v60  ;;  %v407_v3 = vmul.f32 %v406_v1, %v358_v61  ;;  %vm415_vm11 = vmor %vm413_vm9, %vm414_vm7  ;;  %v449_v25 = vand.u32 2147483648, %v334_v63  ;;  %v447_v28 = vand.u32 2147483647, %v334_v63 }
 0x19a   : > { %v410_v5 = vsub.f32 1.0, %v409_v0  ;;  %vm443_vm15 = vweird.f32 %v334_v63 }
 0x19b   : > { %v426_v6 = vmul.f32 %v584_v57, %v425_v2  ;;  %453 = vst.msk [vmem:[%s671_s27] sm:$0xff] %vm219_vm0, %v407_v3  ;;  %v450_v30 = vor.u32 1.1754944e-38, %v449_v25  ;;  %vm448_vm2 = vcmp.eq.f32.partialorder %v447_v28, 8.507059e+37 }
 0x19c   : > { %v411_v9 = vmul.f32 %v586_v59, %v410_v5 }
 0x19d   : > { %v427_v11 = vadd.f32 %v584_v57, %v426_v6 }
 0x19e   : > { %v588_v12 = vpop.eup %587  ;;  %v412_v13 = vadd.f32 %v586_v59, %v411_v9  ;;  %v387_v14 = vpop.f32.mrf.mxu3 }
 0x19f   : > { %v439_v16 = vmul.f32 %v588_v12, %v334_v63  ;;  %v431_v18 = vsel %vm430_vm10, %v584_v57, %v427_v11  ;;  %v361_v22 = vpop.f32.mrf.mxu2  ;;  %vm444_vm14 = vweird.f32 %v588_v12 }
 0x1a0   : > { %v416_v19 = vsel %vm415_vm11, %v586_v59, %v412_v13  ;;  %v436_v20 = vsel %vm433_vm12, %v435_v15, %v431_v18  ;;  %vm445_vm1 = vmor %vm443_vm15, %vm444_vm14 }
 0x1a1   : > { %v440_v21 = vsub.f32 1.0, %v439_v16  ;;  %v421_v23 = vsel %vm418_vm13, %v420_v17, %v416_v19  ;;  %v437_v24 = vmul.f32 %v436_v20, %v387_v14 }
 0x1a2   : > { %v422_v26 = vmul.f32 %v421_v23, %v361_v22 }
 0x1a3   : > { %v441_v27 = vmul.f32 %v588_v12, %v440_v21  ;;  %455 = vst.msk [vmem:[%s671_s27 + $0x10] sm:$0xff] %vm219_vm0, %v437_v24 }
 0x1a4   : > { %454 = vst.msk [vmem:[%s671_s27 + $0x8] sm:$0xff] %vm219_vm0, %v422_v26 }
 0x1a5   : > { %v442_v29 = vadd.f32 %v588_v12, %v441_v27 }
 0x1a6   : > { %v390_v32 = vpop.f32.mrf.mxu3 }
 0x1a7   : > { %v446_v31 = vsel %vm445_vm1, %v588_v12, %v442_v29 }
 0x1a8   : > { %v451_v33 = vsel %vm448_vm2, %v450_v30, %v446_v31 }
 0x1a9   : > { %v452_v34 = vmul.f32 %v451_v33, %v390_v32 }
 0x1ab   : > { %456 = vst.msk [vmem:[%s671_s27 + $0x18] sm:$0xff] %vm219_vm0, %v452_v34 }
 0x1ac PF: > { %s13_s12 = sadd.s32 1, %s595_s12  }
 0x1ad   : > { %p10_p4 = scmp.ge.s32.totalorder %s13_s12, 4  }
 0x1af   :  { %12 = sbr.rel (!%p10_p4) target bundleno = 1 (0x1), region = 68 }

// kernel: block_forward.7
= control target key start
LH: loop header
LB: loop body
LE: loop exit
PB: predicated region body
PF: predicated region fallthrough
CT: control target
= control target key end

     0   :  { %vm26_vm0 = vcmask 261120   ;;  %s397_s0 = inlined_call_operand.vmem [shape: f32[16,32], index: 0, kind: input, shape index: {}]   ;;  %s398_s1 = inlined_call_operand.vmem [shape: f32[1,32], index: 1, kind: input, shape index: {}]   ;;  %s399_s2 = inlined_call_operand.vmem [shape: f32[32,64], index: 2, kind: input, shape index: {}]   ;;  %s400_s3 = inlined_call_operand.vmem [shape: f32[32,64], index: 3, kind: input, shape index: {}]   ;;  %s401_s4 = inlined_call_operand.vmem [shape: f32[64,32], index: 4, kind: input, shape index: {}]   ;;  %s402_s5 = inlined_call_operand.hbm [shape: f32[16,32], index: 5, kind: output, shape index: {}]  }
   0x1   :  { %v318_v0 = vld [vmem:[%s397_s0] sm:$0xff] }
   0x2   :  { %v24_v1 = vmul.f32 %v318_v0, %v318_v0 }
   0x3   :  { %10 = vsyncpa [#allocation3], 0  ;;  %v325_v2 = vld [vmem:[%s397_s0 + $0x8] sm:$0xff]  ;;  %v67_v6 = vld [vmem:[%s399_s2 + $0x18] sm:$0xff]  ;;  %vm174_vm11 = vcmask 523264   ;;  %s214_s29 = sshll.u32 %s402_s5, 4  ;;  %s215_s29 = int_to_ptr.hbm [resolvable:$true] %s214_s29 }
   0x4   :  { %v27_v3 = vsel %vm26_vm0, %v24_v1, 0.0  ;;  %v25_v4 = vmul.f32 %v325_v2, %v325_v2  ;;  %v100_v7 = vld [vmem:[%s400_s3 + $0x18] sm:$0xff]  ;;  %86 = vmatpush.msra.mxu0 %v67_v6  ;;  %v66_v8 = vld [vmem:[%s399_s2 + $0x10] sm:$0xff]  ;;  %v65_v10 = vld [vmem:[%s399_s2 + $0x8] sm:$0xff]  ;;  %s283_s30 = smov 128   ;;  %s284_s6 = smov 8  }
   0x5   :  { %28 = vadd.xlane.f32.xlu0 %v27_v3  ;;  %113 = vmatpush.msra.mxu1 %v100_v7  ;;  %v99_v9 = vld [vmem:[%s400_s3 + $0x10] sm:$0xff]  ;;  %v98_v11 = vld [vmem:[%s400_s3 + $0x8] sm:$0xff]  ;;  %v64_v12 = vld [vmem:[%s399_s2] sm:$0xff] }
   0x6   :  { %v30_v5 = vsel %vm26_vm0, %v25_v4, 0.0  ;;  %87 = vmatpush.msra.mxu0 %v66_v8  ;;  %v97_v13 = vld [vmem:[%s400_s3] sm:$0xff]  ;;  %v173_v39 = vld [vmem:[%s401_s4 + $0x38] sm:$0xff]  ;;  %v172_v40 = vld [vmem:[%s401_s4 + $0x30] sm:$0xff] }
   0x7   :  { %114 = vmatpush.msra.mxu1 %v99_v9  ;;  %v243_v28 = vld [vmem:[%s398_s1] ss:$0 sm:$0xff]  ;;  %189 = vmatpush.msra.mxu2 %v173_v39  ;;  %v171_v41 = vld [vmem:[%s401_s4 + $0x28] sm:$0xff]  ;;  %v169_v43 = vld [vmem:[%s401_s4 + $0x18] sm:$0xff] }
   0x8   :  { %88 = vmatpush.msra.mxu0 %v65_v10  ;;  %232 = vmatpush.msra.mxu3 %v173_v39  ;;  %v170_v42 = vld [vmem:[%s401_s4 + $0x20] sm:$0xff]  ;;  %v168_v44 = vld [vmem:[%s401_s4 + $0x10] sm:$0xff]  ;;  %v167_v45 = vld [vmem:[%s401_s4 + $0x8] sm:$0xff] }
   0x9   :  { %115 = vmatpush.msra.mxu1 %v98_v11  ;;  %190 = vmatpush.msra.mxu2 %v172_v40  ;;  %v166_v48 = vld [vmem:[%s401_s4] sm:$0xff]  ;;  %s282_s4 = smov [#allocation2]  }
   0xa   :  { %89 = vmatpush.msra.mxu0 %v64_v12  ;;  %233 = vmatpush.msra.mxu3 %v172_v40  ;;  %s212_s26 = sshll.u32 %s282_s4, 4  ;;  %s213_s26 = int_to_ptr.vmem [resolvable:$true] %s212_s26 }
   0xb   :  { %116 = vmatpush.msra.mxu1 %v97_v13  ;;  %191 = vmatpush.msra.mxu2 %v171_v41 }
   0xc   :  { %234 = vmatpush.msra.mxu3 %v171_v41 }
   0xd   :  { %31 = vadd.xlane.f32.xlu0 %v30_v5  ;;  %192 = vmatpush.msra.mxu2 %v170_v42 }
   0xe   :  { %235 = vmatpush.msra.mxu3 %v170_v42 }
   0xf   :  { %193 = vmatpush.msra.mxu2 %v169_v43 }
  0x10   :  { %236 = vmatpush.msra.mxu3 %v169_v43 }
  0x11   :  { %194 = vmatpush.msra.mxu2 %v168_v44 }
  0x12   :  { %237 = vmatpush.msra.mxu3 %v168_v44 }
  0x13   :  { %195 = vmatpush.msra.mxu2 %v167_v45 }
  0x14   :  { %238 = vmatpush.msra.mxu3 %v167_v45 }
  0x15   :  { %196 = vmatpush.msra.mxu2 %v166_v48 }
  0x16   :  { %239 = vmatpush.msra.mxu3 %v166_v48 }
  0x78   :  { %v29_v14 = vpop.xlane.xlu0 %28 }
  0x79   :  { %v33_v15 = vmul.f32 0.03125, %v29_v14 }
  0x7b   :  { %v35_v16 = vadd.f32 1e-06, %v33_v15 }
  0x7d   :  { %244 = vrsqrt.f32 %v35_v16  ;;  %vm43_vm2 = vweird.f32 %v35_v16 }
  0x80   :  { %v32_v17 = vpop.xlane.xlu0 %31 }
  0x81   :  { %v34_v18 = vmul.f32 0.03125, %v32_v17 }
  0x83   :  { %v245_v19 = vpop.eup %244  ;;  %v36_v20 = vadd.f32 1e-06, %v34_v18 }
  0x84   :  { %v38_v21 = vmul.f32 %v245_v19, %v35_v16  ;;  %vm44_vm1 = vweird.f32 %v245_v19 }
  0x85   :  { %246 = vrsqrt.f32 %v36_v20  ;;  %vm45_vm3 = vmor %vm43_vm2, %vm44_vm1  ;;  %vm53_vm5 = vweird.f32 %v36_v20 }
  0x86   :  { %v39_v22 = vmul.f32 %v245_v19, %v38_v21 }
  0x88   :  { %v40_v23 = vmul.f32 0.5, %v39_v22 }
  0x8a   :  { %v41_v24 = vsub.f32 1.5, %v40_v23 }
  0x8b   :  { %v247_v25 = vpop.eup %246 }
  0x8c   :  { %v42_v26 = vmul.f32 %v245_v19, %v41_v24  ;;  %v48_v27 = vmul.f32 %v247_v25, %v36_v20  ;;  %vm54_vm4 = vweird.f32 %v247_v25 }
  0x8d   :  { %vm55_vm6 = vmor %vm53_vm5, %vm54_vm4 }
  0x8e   :  { %v49_v29 = vmul.f32 %v247_v25, %v48_v27  ;;  %v46_v30 = vsel %vm45_vm3, %v245_v19, %v42_v26 }
  0x8f   :  { %v57_v31 = vmul.f32 %v46_v30, %v318_v0 }
  0x90   :  { %v50_v32 = vmul.f32 0.5, %v49_v29 }
  0x91   :  { %v62_v33 = vmul.f32 %v243_v28, %v57_v31 }
  0x92   :  { %v51_v34 = vsub.f32 1.5, %v50_v32 }
  0x93   :  { %226 = vmatmul.msk.f32.vlgmr.msra.gmra.mxu0 %vm26_vm0, %v62_v33  ;;  %228 = vmatmul.msk.f32.vlgmr.msra.gmra.mxu1 %vm26_vm0, %v62_v33 }
  0x94   :  { %v52_v35 = vmul.f32 %v247_v25, %v51_v34 }
  0x96   :  { %v56_v36 = vsel %vm55_vm6, %v247_v25, %v52_v35 }
  0x97   :  { %v58_v37 = vmul.f32 %v56_v36, %v325_v2 }
  0x99   :  { %v63_v38 = vmul.f32 %v243_v28, %v58_v37 }
  0x9b   :  { %227 = vmatmul.msk.f32.gmra.mxu0 %vm26_vm0, %v63_v38  ;;  %229 = vmatmul.msk.f32.gmra.mxu1 %vm26_vm0, %v63_v38 }
 0x110   :  { %v91_v46 = vpop.f32.mrf.mxu0  ;;  %v118_v7 = vpop.f32.mrf.mxu1 }
 0x111   :  { %v124_v47 = vsub.f32 0.0, %v91_v46 }
 0x113   :  { %v126_v49 = vmul.f32 1.442695, %v124_v47 }
 0x115   :  { %248 = vpow2.f32 %v126_v49 }
 0x118   :  { %v94_v50 = vpop.f32.mrf.mxu0  ;;  %v121_v19 = vpop.f32.mrf.mxu1 }
 0x119   :  { %v125_v51 = vsub.f32 0.0, %v94_v50 }
 0x11b   :  { %v249_v52 = vpop.eup %248  ;;  %v128_v53 = vmul.f32 1.442695, %v125_v51 }
 0x11c   :  { %v130_v54 = vadd.f32 1.0, %v249_v52 }
 0x11d   :  { %250 = vpow2.f32 %v128_v53 }
 0x11e   :  { %252 = vrcp.f32 %v130_v54  ;;  %v143_v60 = vand.u32 2147483648, %v130_v54  ;;  %v141_v62 = vand.u32 2147483647, %v130_v54  ;;  %vm137_vm8 = vweird.f32 %v130_v54 }
 0x120   :  { %v144_v3 = vor.u32 1.1754944e-38, %v143_v60  ;;  %vm142_vm10 = vcmp.eq.f32.partialorder %v141_v62, 8.507059e+37 }
 0x123   :  { %v251_v55 = vpop.eup %250 }
 0x124   :  { %v253_v56 = vpop.eup %252  ;;  %v131_v57 = vadd.f32 1.0, %v251_v55 }
 0x125   :  { %v133_v58 = vmul.f32 %v253_v56, %v130_v54  ;;  %vm138_vm7 = vweird.f32 %v253_v56 }
 0x126   :  { %254 = vrcp.f32 %v131_v57  ;;  %vm139_vm9 = vmor %vm137_vm8, %vm138_vm7  ;;  %v158_v10 = vand.u32 2147483648, %v131_v57  ;;  %v156_v13 = vand.u32 2147483647, %v131_v57  ;;  %vm152_vm13 = vweird.f32 %v131_v57 }
 0x127   :  { %v134_v59 = vsub.f32 1.0, %v133_v58 }
 0x128   :  { %v159_v15 = vor.u32 1.1754944e-38, %v158_v10  ;;  %vm157_vm15 = vcmp.eq.f32.partialorder %v156_v13, 8.507059e+37 }
 0x129   :  { %v135_v61 = vmul.f32 %v253_v56, %v134_v59 }
 0x12b   :  { %v136_v63 = vadd.f32 %v253_v56, %v135_v61 }
 0x12c   :  { %v255_v1 = vpop.eup %254 }
 0x12d   :  { %v140_v4 = vsel %vm139_vm9, %v253_v56, %v136_v63  ;;  %v148_v5 = vmul.f32 %v255_v1, %v131_v57  ;;  %vm153_vm12 = vweird.f32 %v255_v1 }
 0x12e   :  { %v145_v6 = vsel %vm142_vm10, %v144_v3, %v140_v4  ;;  %vm154_vm14 = vmor %vm152_vm13, %vm153_vm12 }
 0x12f   :  { %v162_v8 = vmul.f32 %v145_v6, %v91_v46  ;;  %v149_v9 = vsub.f32 1.0, %v148_v5 }
 0x131   :  { %v164_v11 = vmul.f32 %v162_v8, %v118_v7  ;;  %v150_v12 = vmul.f32 %v255_v1, %v149_v9 }
 0x133   :  { %v151_v14 = vadd.f32 %v255_v1, %v150_v12  ;;  %230 = vmatmul.msk.f32.vlgmr.msra.gmra.mxu2 %vm174_vm11, %v164_v11 }
 0x135   :  { %v155_v16 = vsel %vm154_vm14, %v255_v1, %v151_v14 }
 0x136   :  { %v160_v17 = vsel %vm157_vm15, %v159_v15, %v155_v16 }
 0x137   :  { %v163_v18 = vmul.f32 %v160_v17, %v94_v50 }
 0x139   :  { %v165_v20 = vmul.f32 %v163_v18, %v121_v19 }
 0x13b   :  { %231 = vmatmul.msk.f32.vlgmr.msra.gmra.mxu3 %vm174_vm11, %v165_v20 }
 0x1b6   :  { %v198_v21 = vpop.f32.mrf.mxu2 }
 0x1b7   :  { %v204_v22 = vadd.f32 %v198_v21, %v318_v0 }
 0x1b9   :  { %206 = vst.msk [vmem:[#allocation2] sm:$0xff] %vm26_vm0, %v204_v22 }
 0x1be   :  { %v201_v23 = vpop.f32.mrf.mxu3 }
 0x1bf   :  { %v205_v24 = vadd.f32 %v201_v23, %v325_v2 }
 0x1c1   :  { %207 = vst.msk [vmem:[#allocation2 + $0x8] sm:$0xff] %vm26_vm0, %v205_v24 }
 0x1c2   :  { %220 = dma.vmem_to_hbm [thread:$0]  %s213_s26, 256, %s215_s29, [#allocation3], %s283_s30, %s283_s30, %s284_s6  }
 0x1c3   :  { %280 = dma.done.wait [#allocation3], 256  }
 0x1c4   :  { %281 = vsyncadd [#allocation3], 4294967040 }
 0x1c5   :  { %225 = vsyncpa [#allocation3], 1 }

</bundles_post_ra>
